<compile_context>
chip_gen: v6e
topology: v6e:2x2x1
jax: 0.10.0
libtpu: 0.0.40
codegen_flags: <defaults>
</compile_context>

<pallas_src>
import math

import jax
import jax.numpy as jnp
from jax.experimental import pallas as pl
from jax.experimental.pallas import tpu as pltpu


# ----------------------------- kernels ---------------------------------------
def _mm_bias_kernel(x_ref, w_ref, b_ref, o_ref, acc_ref):
    # x_ref: (tm, tk)   w_ref: (tk, tn)   b_ref: (1, tn)   o_ref: (tm, tn)
    @pl.when(pl.program_id(2) == 0)
    def _():
        acc_ref[...] = jnp.zeros_like(acc_ref)

    acc_ref[...] += jnp.dot(x_ref[...], w_ref[...],
                            preferred_element_type=jnp.float32)

    @pl.when(pl.program_id(2) == pl.num_programs(2) - 1)
    def _():
        o_ref[...] = (acc_ref[...] + b_ref[...]).astype(o_ref.dtype)


def _mm_kernel(x_ref, w_ref, o_ref, acc_ref):
    @pl.when(pl.program_id(2) == 0)
    def _():
        acc_ref[...] = jnp.zeros_like(acc_ref)

    acc_ref[...] += jnp.dot(x_ref[...], w_ref[...],
                            preferred_element_type=jnp.float32)

    @pl.when(pl.program_id(2) == pl.num_programs(2) - 1)
    def _():
        o_ref[...] = acc_ref[...].astype(o_ref.dtype)


def _mm_bias_single_kernel(x_ref, w_ref, b_ref, o_ref):
    acc = jnp.dot(x_ref[...], w_ref[...], preferred_element_type=jnp.float32)
    o_ref[...] = (acc + b_ref[...]).astype(o_ref.dtype)


def _mm_single_kernel(x_ref, w_ref, o_ref):
    acc = jnp.dot(x_ref[...], w_ref[...], preferred_element_type=jnp.float32)
    o_ref[...] = acc.astype(o_ref.dtype)


# ----------------------------- helpers ----------------------------------------
def _round_up(a, b):
    return (a + b - 1) // b * b


def _pad2d(a, rows, cols):
    r, c = a.shape
    if r == rows and c == cols:
        return a
    return jnp.pad(a, ((0, rows - r), (0, cols - c)))


def _pick_tile(total, max_tile, quantum=128):
    """Largest multiple of `quantum` that divides `total` (itself a multiple of
    `quantum`) and is <= max_tile."""
    if total <= max_tile:
        return total
    q = total // quantum
    d = max(1, max_tile // quantum)
    while d > 1 and q % d != 0:
        d -= 1
    return d * quantum


# ----------------------------- module-like wrapper ----------------------------
def make_xavier_linear(weight, bias=None, *, tm=1024, tn=512, tk=1024,
                       compute_dtype=None, out_dtype=None):
    """Build an `apply(x)` closure with the weight preprocessed exactly once.

    weight: (d_out, d_in); bias: (d_out,) or None.
    compute_dtype: None keeps the input dtype (f32-exact vs PyTorch ref);
      jnp.bfloat16 halves HBM/VMEM traffic and uses the bf16-native MXU
      (numerics differ slightly from the f32 reference).
    """
    d_out, d_in = weight.shape
    Kp = _round_up(d_in, 128)
    Np = _round_up(d_out, 128)

    # One-time: pad to lane-aligned shape, transpose to (Kp, Np) so the kernel
    # contraction is a plain A @ B (no in-kernel XLU transpose), optional cast.
    w_t = jnp.asarray(_pad2d(weight, Np, Kp).T)
    if compute_dtype is not None:
        w_t = w_t.astype(compute_dtype)

    has_bias = bias is not None
    b_row = (_pad2d(bias.astype(jnp.float32).reshape(1, d_out), 1, Np)
             if has_bias else None)

    def apply(x, *, tm=tm, tn=tn, tk=tk):
        assert x.shape[-1] == d_in, "last dim of x must equal d_in"
        lead_shape = x.shape[:-1]
        M = math.prod(lead_shape)
        out_dt = out_dtype or x.dtype

        x2d = x.reshape(M, d_in)
        if compute_dtype is not None:
            x2d = x2d.astype(compute_dtype)

        # ---- tile selection (sublane=8, lane=128 aligned) --------------------
        m_aligned = _round_up(max(M, 1), 8)
        tm_ = min(tm, m_aligned)
        Mp = _round_up(m_aligned, tm_)
        grid_m = Mp // tm_

        tk_ = _pick_tile(Kp, tk)          # divides Kp
        grid_k = Kp // tk_

        tn_ = _pick_tile(Np, tn)          # divides Np
        if grid_m == 1 and Np // tn_ == 1 and Np >= 256:
            # v7x megacore: ensure >=2 blocks on a "parallel" axis.
            tn_ = _pick_tile(Np, Np // 2)
        grid_n = Np // tn_

        # ---- per-call padding of x (M to tile, K to 128-aligned Kp) ----------
        x_p = _pad2d(x2d, Mp, Kp)

        # ---- VMEM budget from the actual tiles (double-buffered) -------------
        in_sz = jnp.dtype(x_p.dtype).itemsize
        w_sz = jnp.dtype(w_t.dtype).itemsize
        out_sz = jnp.dtype(out_dt).itemsize
        need = (2 * (tm_ * tk_ * in_sz + tk_ * tn_ * w_sz + tm_ * tn_ * out_sz)
                + (tm_ * tn_ * 4 if grid_k > 1 else 0)
                + (2 * tn_ * 4 if has_bias else 0))
        # 32 MiB floor (v5e default scoped is only 16 MiB), 64 MiB cap (v7x).
        vmem_limit = int(min(64 << 20, max(need + (4 << 20), 32 << 20)))

        cost = pl.CostEstimate(
            flops=2 * Mp * Kp * Np,
            transcendentals=0,
            bytes_accessed=int(Mp * Kp * in_sz * grid_n
                               + Kp * Np * w_sz * grid_m
                               + Mp * Np * out_sz))

        if grid_k == 1:
            # K fits in one tile: drop the K axis and the accumulator scratch.
            in_specs = [
                pl.BlockSpec((tm_, Kp), lambda i, j: (i, 0)),
                pl.BlockSpec((Kp, tn_), lambda i, j: (0, j)),
            ]
            if has_bias:
                in_specs.append(pl.BlockSpec((1, tn_), lambda i, j: (0, j)))
            kernel = _mm_bias_single_kernel if has_bias else _mm_single_kernel
            grid_spec = pltpu.PrefetchScalarGridSpec(
                num_scalar_prefetch=0,
                grid=(grid_m, grid_n),
                in_specs=in_specs,
                out_specs=pl.BlockSpec((tm_, tn_), lambda i, j: (i, j)),
            )
            dims = ("parallel", "parallel")
        else:
            in_specs = [
                pl.BlockSpec((tm_, tk_), lambda i, j, k: (i, k)),
                pl.BlockSpec((tk_, tn_), lambda i, j, k: (k, j)),
            ]
            if has_bias:
                in_specs.append(pl.BlockSpec((1, tn_), lambda i, j, k: (0, j)))
            kernel = _mm_bias_kernel if has_bias else _mm_kernel
            grid_spec = pltpu.PrefetchScalarGridSpec(
                num_scalar_prefetch=0,
                grid=(grid_m, grid_n, grid_k),
                in_specs=in_specs,
                out_specs=pl.BlockSpec((tm_, tn_), lambda i, j, k: (i, j)),
                scratch_shapes=[pltpu.VMEM((tm_, tn_), jnp.float32)],
            )
            dims = ("parallel", "parallel", "arbitrary")

        args = (x_p, w_t, b_row) if has_bias else (x_p, w_t)
        out_p = pl.pallas_call(
            kernel,
            out_shape=jax.ShapeDtypeStruct((Mp, Np), out_dt),
            grid_spec=grid_spec,
            compiler_params=pltpu.CompilerParams(
                dimension_semantics=dims,
                vmem_limit_bytes=vmem_limit),
            cost_estimate=cost,
        )(*args)

        return out_p[:M, :d_out].reshape(*lead_shape, d_out)

    return apply


def xavier_linear(x, weight, bias=None, **kwargs):
    """One-shot convenience (re-preps the weight each call; prefer
    make_xavier_linear when the layer is applied repeatedly)."""
    return make_xavier_linear(weight, bias, **kwargs)(x)


def init_xavier_linear_params(key, d_in, d_out, bias=True, dtype=jnp.float32):
    # nn.init.xavier_uniform_: U(-a, a), a = sqrt(6 / (fan_in + fan_out))
    a = math.sqrt(6.0 / (d_in + d_out))
    w = jax.random.uniform(key, (d_out, d_in), dtype=dtype, minval=-a, maxval=a)
    b = jnp.zeros((d_out,), dtype=dtype) if bias else None
    return w, b


if __name__ == "__main__":
    key = jax.random.PRNGKey(0)
    k_w, k_x, k_w2, k_x2, k_w3, k_x3 = jax.random.split(key, 6)

    # --- small shapes, single-K fast path, with bias, f32 (exact) ------------
    batch, seq, d_in, d_out = 2, 8, 32, 64
    weight, bias = init_xavier_linear_params(k_w, d_in, d_out, bias=True)
    x = jax.random.normal(k_x, (batch, seq, d_in), dtype=jnp.float32)

    layer = make_xavier_linear(weight, bias)
    y = jax.block_until_ready(layer(x))
    y_ref = x @ weight.T + bias
    assert y.shape == (batch, seq, d_out)
    assert jnp.allclose(y, y_ref, atol=1e-5, rtol=1e-5)

    # --- K-tiled accumulator path (no bias, forced small tk), f32 ------------
    d_in2, d_out2 = 512, 256
    weight2, _ = init_xavier_linear_params(k_w2, d_in2, d_out2, bias=False)
    x2 = jax.random.normal(k_x2, (batch, seq, d_in2), dtype=jnp.float32)

    layer2 = make_xavier_linear(weight2, None, tk=256)   # grid_k = 2
    y2 = jax.block_until_ready(layer2(x2))
    y2_ref = x2 @ weight2.T
    assert y2.shape == (batch, seq, d_out2)
    assert jnp.allclose(y2, y2_ref, atol=1e-4, rtol=1e-4)

    # --- bf16 compute path (MXU-native), with bias, loose tolerance ----------
    d_in3, d_out3 = 256, 128
    weight3, bias3 = init_xavier_linear_params(k_w3, d_in3, d_out3, bias=True)
    x3 = jax.random.normal(k_x3, (batch, seq, d_in3), dtype=jnp.float32)

    layer3 = make_xavier_linear(weight3, bias3, compute_dtype=jnp.bfloat16)
    y3 = jax.block_until_ready(layer3(x3))
    y3_ref = x3 @ weight3.T + bias3
    assert y3.shape == (batch, seq, d_out3)
    assert jnp.allclose(y3, y3_ref, atol=5e-2, rtol=5e-2)

    print("KERNEL_OK")
</pallas_src>

<mosaic_0001>
module attributes {stable_mosaic.version = 11 : i64} {
  func.func @_mm_bias_single_kernel(%arg0: i32, %arg1: i32, %arg2: memref<16x128xf32, #tpu.memory_space<vmem>>, %arg3: memref<128x128xf32, #tpu.memory_space<vmem>>, %arg4: memref<1x128xf32, #tpu.memory_space<vmem>>, %arg5: memref<16x128xf32, #tpu.memory_space<vmem>>) attributes {dimension_semantics = [#tpu.dimension_semantics<parallel>, #tpu.dimension_semantics<parallel>], iteration_bounds = array<i64: 1, 1>, scalar_prefetch = 0 : i64, scratch_operands = 0 : i64, tpu.core_type = #tpu.core_type<tc>, window_params = [{transform_indices = @transform_0, window_bounds = array<i64: 16, 128>}, {transform_indices = @transform_1, window_bounds = array<i64: 128, 128>}, {transform_indices = @transform_2, window_bounds = array<i64: 1, 128>}, {transform_indices = @transform_3, window_bounds = array<i64: 16, 128>}]} {
    %c0 = arith.constant 0 : index
    %c0_0 = arith.constant 0 : index
    %0 = vector.load %arg2[%c0, %c0_0] : memref<16x128xf32, #tpu.memory_space<vmem>>, vector<16x128xf32>
    %c0_1 = arith.constant 0 : index
    %c0_2 = arith.constant 0 : index
    %1 = vector.load %arg3[%c0_1, %c0_2] : memref<128x128xf32, #tpu.memory_space<vmem>>, vector<128x128xf32>
    %cst = arith.constant dense<0.000000e+00> : vector<16x128xf32>
    %2 = tpu.matmul %0, %1, %cst {dimension_numbers = #tpu.dot_dimension_numbers<[1], [0], [0], [1], [0, 0, 1, 1], [], []>} : vector<16x128xf32>, vector<128x128xf32>, vector<16x128xf32> -> vector<16x128xf32>
    %c0_3 = arith.constant 0 : index
    %c0_4 = arith.constant 0 : index
    %3 = vector.load %arg4[%c0_3, %c0_4] : memref<1x128xf32, #tpu.memory_space<vmem>>, vector<1x128xf32>
    %4 = vector.broadcast %3 : vector<1x128xf32> to vector<16x128xf32>
    %5 = arith.addf %2, %4 : vector<16x128xf32>
    %c0_5 = arith.constant 0 : index
    %c0_6 = arith.constant 0 : index
    %6 = vector.load %arg5[%c0_5, %c0_6] : memref<16x128xf32, #tpu.memory_space<vmem>>, vector<16x128xf32>
    tpu.vector_store %arg5[%c0_5, %c0_6], %5 {strides = array<i32>} : memref<16x128xf32, #tpu.memory_space<vmem>>, vector<16x128xf32>,
    return
  }
  func.func @transform_0(%arg0: i32, %arg1: i32) -> (i32, i32) {
    %c0_i32 = arith.constant 0 : i32
    %c0_i32_0 = arith.constant 0 : i32
    return %arg0, %c0_i32 : i32, i32
  }
  func.func @transform_1(%arg0: i32, %arg1: i32) -> (i32, i32) {
    %c0_i32 = arith.constant 0 : i32
    %c0_i32_0 = arith.constant 0 : i32
    return %c0_i32, %arg1 : i32, i32
  }
  func.func @transform_2(%arg0: i32, %arg1: i32) -> (i32, i32) {
    %c0_i32 = arith.constant 0 : i32
    %c0_i32_0 = arith.constant 0 : i32
    return %c0_i32, %arg1 : i32, i32
  }
  func.func @transform_3(%arg0: i32, %arg1: i32) -> (i32, i32) {
    %c0_i32 = arith.constant 0 : i32
    return %arg0, %arg1 : i32, i32
  }
}

</mosaic_0001>

<bundles_post_ra>
// kernel: tpu_custom_call.1
= control target key start
LH: loop header
LB: loop body
LE: loop exit
PB: predicated region body
PF: predicated region fallthrough
CT: control target
= control target key end

     0   :  { %8 = vsyncpa [#allocation3], 0  ;;  %s334_s0 = inlined_call_operand.hbm [shape: f32[16,128], index: 0, kind: input, shape index: {}]   ;;  %s335_s1 = inlined_call_operand.hbm [shape: f32[128,128], index: 1, kind: input, shape index: {}]   ;;  %s336_s2 = inlined_call_operand.vmem [shape: f32[1,128], index: 2, kind: input, shape index: {}]   ;;  %s337_s3 = inlined_call_operand.hbm [shape: f32[16,128], index: 3, kind: output, shape index: {}]  }
   0x1   :  { %9 = vsyncpa [#allocation6], 0 }
   0x2   :  { %10 = vsyncpa [#allocation4], 0  ;;  %s288_s12 = smov [#allocation2]  }
   0x3   :  { %s16_s13 = sshll.u32 %s288_s12, 4  ;;  %s17_s13 = int_to_ptr.vmem [resolvable:$true] %s16_s13 }
   0x4   :  { %s230_s14 = scalar_lea.vmem %s17_s13, 256  ;;  %p235_p1 = scmp.lt.s32.totalorder %s17_s13, %s17_s13 }
   0x5   :  { %p231_p0 = scmp.ne.s32.totalorder %s17_s13, %s230_s14  ;;  %p236_p2 = scmp.lt.s32.totalorder %s230_s14, %s230_s14 }
   0x7   :  { %p237_p3 = por %p236_p2, %p235_p1 }
   0x9   :  { %p238_p4 = pnand %p237_p3, %p231_p0 }
   0xb   :  { %241 = shalt.err (!%p238_p4)
}
   0xc   :  { %s289_s15 = smov 128   ;;  %s290_s16 = smov 8  }
   0xd   :  { %22 = dma.hbm_to_vmem [thread:$0]  %s334_s0, 256, %s17_s13, [#allocation3], %s289_s15, %s289_s15, %s290_s16  }
   0xe   :  { %s291_s19 = smov [#allocation5]  }
   0xf   :  { %s28_s20 = sshll.u32 %s291_s19, 4  ;;  %s29_s20 = int_to_ptr.vmem [resolvable:$true] %s28_s20 }
  0x10   :  { %s250_s21 = scalar_lea.vmem %s29_s20, 2048  ;;  %p255_p6 = scmp.lt.s32.totalorder %s29_s20, %s29_s20 }
  0x11   :  { %p251_p5 = scmp.ne.s32.totalorder %s29_s20, %s250_s21  ;;  %p256_p7 = scmp.lt.s32.totalorder %s250_s21, %s250_s21 }
  0x13   :  { %p257_p8 = por %p256_p7, %p255_p6 }
  0x15   :  { %p258_p9 = pnand %p257_p8, %p251_p5 }
  0x17   :  { %261 = shalt.err (!%p258_p9)
}
  0x18   :  { %34 = dma.hbm_to_vmem [thread:$0]  %s335_s1, 2048, %s29_s20, [#allocation6], %s289_s15, %s289_s15, %s290_s16  }
  0x19   :  { %282 = dma.done.wait [#allocation3], 256  }
  0x1a   :  { %283 = vsyncadd [#allocation3], 4294967040 }
  0x1b   :  { %284 = dma.done.wait [#allocation6], 2048  }
  0x1c   :  { %285 = vsyncadd [#allocation6], 4294965248  ;;  %v60_v0 = vld [vmem:[#allocation5 + $0x78] sm:$0xff]  ;;  %v59_v1 = vld [vmem:[#allocation5 + $0x70] sm:$0xff]  ;;  %s292_s24 = smov [#allocation7]  }
  0x1d   :  { %182 = vmatprep.subr.mxu0 %v60_v0  ;;  %v58_v2 = vld [vmem:[#allocation5 + $0x68] sm:$0xff]  ;;  %v57_v3 = vld [vmem:[#allocation5 + $0x60] sm:$0xff]  ;;  %v43_v4 = vld [vmem:[#allocation2] sm:$0xff]  ;;  %s150_s25 = sshll.u32 %s292_s24, 4  ;;  %s151_s25 = int_to_ptr.vmem [resolvable:$true] %s150_s25 }
  0x1e   :  { %183 = vmatpush3.msra.mxu0 %v60_v0  ;;  %v56_v5 = vld [vmem:[#allocation5 + $0x58] sm:$0xff]  ;;  %214 = vmatprep.mubr.f32.mxu0 %v43_v4  ;;  %v55_v6 = vld [vmem:[#allocation5 + $0x50] sm:$0xff]  ;;  %v54_v7 = vld [vmem:[#allocation5 + $0x48] sm:$0xff]  ;;  %s262_s26 = scalar_lea.vmem %s151_s25, 256  ;;  %p267_p11 = scmp.lt.s32.totalorder %s151_s25, %s151_s25 }
  0x1f   :  { %184 = vmatprep.subr.mxu0 %v59_v1  ;;  %v53_v8 = vld [vmem:[#allocation5 + $0x40] sm:$0xff]  ;;  %v52_v9 = vld [vmem:[#allocation5 + $0x38] sm:$0xff]  ;;  %v51_v10 = vld [vmem:[#allocation5 + $0x30] sm:$0xff]  ;;  %p263_p10 = scmp.ne.s32.totalorder %s151_s25, %s262_s26  ;;  %p268_p12 = scmp.lt.s32.totalorder %s262_s26, %s262_s26 }
  0x20   :  { %185 = vmatpush3.msra.mxu0 %v59_v1  ;;  %v50_v11 = vld [vmem:[#allocation5 + $0x28] sm:$0xff]  ;;  %v49_v12 = vld [vmem:[#allocation5 + $0x20] sm:$0xff]  ;;  %v48_v13 = vld [vmem:[#allocation5 + $0x18] sm:$0xff] }
  0x21   :  { %186 = vmatprep.subr.mxu0 %v58_v2  ;;  %v47_v14 = vld [vmem:[#allocation5 + $0x10] sm:$0xff]  ;;  %v46_v15 = vld [vmem:[#allocation5 + $0x8] sm:$0xff]  ;;  %v45_v16 = vld [vmem:[#allocation5] sm:$0xff]  ;;  %p269_p13 = por %p268_p12, %p267_p11 }
  0x22   :  { %187 = vmatpush3.msra.mxu0 %v58_v2  ;;  %v44_v17 = vld [vmem:[#allocation2 + $0x8] sm:$0xff]  ;;  %v163_v18 = vld [vmem:[%s336_s2] ss:$0 sm:$0xff] }
  0x23   :  { %188 = vmatprep.subr.mxu0 %v57_v3  ;;  %p270_p0 = pnand %p269_p13, %p263_p10 }
  0x24   :  { %189 = vmatpush3.msra.mxu0 %v57_v3 }
  0x25   :  { %190 = vmatprep.subr.mxu0 %v56_v5 }
  0x26   :  { %191 = vmatpush3.msra.mxu0 %v56_v5 }
  0x27   :  { %192 = vmatprep.subr.mxu0 %v55_v6 }
  0x28   :  { %193 = vmatpush3.msra.mxu0 %v55_v6 }
  0x29   :  { %194 = vmatprep.subr.mxu0 %v54_v7 }
  0x2a   :  { %195 = vmatpush3.msra.mxu0 %v54_v7 }
  0x2b   :  { %196 = vmatprep.subr.mxu0 %v53_v8 }
  0x2c   :  { %197 = vmatpush3.msra.mxu0 %v53_v8 }
  0x2d   :  { %198 = vmatprep.subr.mxu0 %v52_v9 }
  0x2e   :  { %199 = vmatpush3.msra.mxu0 %v52_v9 }
  0x2f   :  { %200 = vmatprep.subr.mxu0 %v51_v10 }
  0x30   :  { %201 = vmatpush3.msra.mxu0 %v51_v10 }
  0x31   :  { %202 = vmatprep.subr.mxu0 %v50_v11 }
  0x32   :  { %203 = vmatpush3.msra.mxu0 %v50_v11 }
  0x33   :  { %204 = vmatprep.subr.mxu0 %v49_v12 }
  0x34   :  { %205 = vmatpush3.msra.mxu0 %v49_v12 }
  0x35   :  { %206 = vmatprep.subr.mxu0 %v48_v13 }
  0x36   :  { %207 = vmatpush3.msra.mxu0 %v48_v13 }
  0x37   :  { %208 = vmatprep.subr.mxu0 %v47_v14 }
  0x38   :  { %209 = vmatpush3.msra.mxu0 %v47_v14 }
  0x39   :  { %210 = vmatprep.subr.mxu0 %v46_v15 }
  0x3a   :  { %211 = vmatpush3.msra.mxu0 %v46_v15 }
  0x3b   :  { %212 = vmatprep.subr.mxu0 %v45_v16 }
  0x3c   :  { %213 = vmatpush3.msra.mxu0 %v45_v16 }
  0x3d   :  { %215 = vmatmul.mubr.f32.vlgmr.msra.gmra.mxu0 %v44_v17 }
  0xfd   :  { %v216_v19 = vpop.f32.mrf.mxu0 }
  0xfe   :  { %v140_v20 = vadd.f32 %v216_v19, %v163_v18 }
  0xff   :  { %v134_v21 = vpop.f32.mrf.mxu0 }
 0x100   :  { %144 = vst [vmem:[#allocation7 + $0x8] sm:$0xff] %v140_v20  ;;  %v135_v22 = vadd.f32 %v163_v18, %v134_v21 }
 0x102   :  { %143 = vst [vmem:[#allocation7] sm:$0xff] %v135_v22 }
 0x103   :  { %273 = shalt.err (!%p270_p0)
}
 0x104   :  { %156 = dma.vmem_to_hbm [thread:$0]  %s151_s25, 256, %s337_s3, [#allocation4], %s289_s15, %s289_s15, %s290_s16  }
 0x105   :  { %286 = dma.done.wait [#allocation4], 256  }
 0x106   :  { %287 = vsyncadd [#allocation4], 4294967040 }
 0x107   :  { %160 = vsyncpa [#allocation3], 1 }
 0x108   :  { %161 = vsyncpa [#allocation6], 1 }
 0x109   :  { %162 = vsyncpa [#allocation4], 1 }

</bundles_post_ra>
